<compile_context>
chip_gen: v5e
topology: v5e:2x2
jax: 0.10.0
libtpu: 0.0.40
codegen_flags: <defaults>
</compile_context>

<pallas_src>
import math
import functools

import numpy as np
import jax
import jax.numpy as jnp
from jax import lax
from jax.experimental import pallas as pl
from jax.experimental.pallas import tpu as pltpu

LOG2 = math.log(2.0)
BN_EPS = 1e-5
_COMPILER_PARAMS = pltpu.CompilerParams(vmem_limit_bytes=32 * 1024 * 1024)


def _vmem_specs(n):
    return [pl.BlockSpec(memory_space=pltpu.MemorySpace.VMEM) for _ in range(n)]


def _bn_relu(z):
    # BatchNorm1d (training-mode batch stats, gamma=1, beta=0) + ReLU.
    # Single-pass stats: var = E[z^2] - E[z]^2, clamped at 0 before rsqrt.
    mu = jnp.mean(z, axis=0, keepdims=True)
    var = jnp.maximum(jnp.mean(z * z, axis=0, keepdims=True) - mu * mu, 0.0)
    return jnp.maximum((z - mu) * lax.rsqrt(var + BN_EPS), 0.0)


def _softplus_neg(s):
    # softplus(-s) = max(-s, 0) + log(1 + exp(-|s|)).
    # log(1+x) vs log1p(x): worst-case absolute error < 1.2e-7 (x in (0,1]),
    # negligible against the log(2)-scale JSD terms; kept in this form because it
    # is a guaranteed-supported Mosaic lowering.
    return jnp.maximum(-s, 0.0) + jnp.log(1.0 + jnp.exp(-jnp.abs(s)))


# ---------------------------------------------------------------------------
# Fused GIN encoder (all layers in one kernel):
#   per layer:  agg = A @ h + (1+eps)*h          (GINConv, 'sum' aggregation)
#               z   = agg @ W + b                (MLP, num_mlp_layers=1)
#               z   = relu(BN(z))                (ApplyNodeFunc)
#               h   = relu(BN(z))                (GIN outer BN + ReLU)
# ---------------------------------------------------------------------------
def _encoder_kernel(n_layers, eps, *refs):
    a_ref, h_ref = refs[0], refs[1]
    o_ref = refs[-1]
    a = a_ref[...]                      # adjacency stays resident across layers
    h = h_ref[...]
    for l in range(n_layers):
        w = refs[2 + 2 * l][...]
        b = refs[3 + 2 * l][...]
        agg = jnp.dot(a, h, preferred_element_type=jnp.float32) + (1.0 + eps) * h
        z = jnp.dot(agg, w, preferred_element_type=jnp.float32) + b
        z = _bn_relu(z)                 # ApplyNodeFunc BN + ReLU
        h = _bn_relu(z)                 # GIN outer BN + ReLU
    o_ref[...] = h


def encoder_forward(a_agg, features, enc_params, eps=0.0):
    n = features.shape[0]
    hid = enc_params[-1][0].shape[1]
    n_layers = len(enc_params)
    flat = []
    for (w, b) in enc_params:
        flat.extend([w, b])
    return pl.pallas_call(
        functools.partial(_encoder_kernel, n_layers, eps),
        out_shape=jax.ShapeDtypeStruct((n, hid), jnp.float32),
        in_specs=_vmem_specs(2 + 2 * n_layers),
        out_specs=pl.BlockSpec(memory_space=pltpu.MemorySpace.VMEM),
        compiler_params=_COMPILER_PARAMS,
    )(a_agg, features, *flat)


# ---------------------------------------------------------------------------
# Fused discriminator + JSD loss kernel (all hops, positive AND negative pass).
#
# Per hop s (pre-push values are scored, then push/reduce runs — matches DGL):
#   scores:  t = relu(Ssrc@(root@Wlr) + Ssrc@(m@Wlm) + Sdst@(x@Wlx) + b_lin)
#            score = t @ W_us + b_us                           (pos & neg root)
#   JSD:     E_pos += sum(log2 - softplus(-score_pos))   over valid edges
#            E_neg += sum(softplus(-score_neg) + score_neg - log2)
#   push (depth-2 path): for receiving nodes d,
#            m[d]    = relu(fc(x[d]) + mean_{s->d} fc(m[s]))
#            root[d] = mean_{s->d} root[s]
#   non-receivers keep previous m / root (mask).
# 'agg' is the dense (N,N) per-hop mean-aggregation matrix.
# ---------------------------------------------------------------------------
def _disc_loss_kernel(n_steps, inv_pos, inv_neg,
                      pos_ref, perm_ref, x_ref,
                      ssrc_ref, sdst_ref, ev_ref, agg_ref, mask_ref,
                      wlr_ref, wlm_ref, wlx_ref, bl_ref,
                      wus_ref, bus_ref, wfc_ref, bfc_ref,
                      loss_ref):
    root_p = pos_ref[...]
    # negative = positive[perm], computed in-kernel (perm_ref is a 0/1 matrix)
    root_n = jnp.dot(perm_ref[...], root_p, preferred_element_type=jnp.float32)
    x = x_ref[...]
    wlr = wlr_ref[...]
    wlm = wlm_ref[...]
    bl = bl_ref[...]
    wus = wus_ref[...]
    bus = bus_ref[...]
    wfc = wfc_ref[...]
    bfc = bfc_ref[...]

    m = jnp.zeros_like(root_p)
    # hop-invariant terms, hoisted out of the hop loop
    fcx = jnp.dot(x, wfc, preferred_element_type=jnp.float32) + bfc
    xWx = jnp.dot(x, wlx_ref[...], preferred_element_type=jnp.float32)

    e_pos = 0.0
    e_neg = 0.0
    for s in range(n_steps):
        Ss = ssrc_ref[s]          # (E, N) 0/1 src selection
        Sd = sdst_ref[s]          # (E, N) 0/1 dst selection
        ev = ev_ref[s]            # (E, 1) edge-validity mask (padding)
        A = agg_ref[s]            # (N, N) mean aggregation over this hop's edges
        mk = mask_ref[s]          # (N, 1) receiving-node mask

        # --- edge scores (concat replaced by sliced-weight matmuls) ---------
        shared = (jnp.dot(Ss, jnp.dot(m, wlm, preferred_element_type=jnp.float32),
                          preferred_element_type=jnp.float32)
                  + jnp.dot(Sd, xWx, preferred_element_type=jnp.float32) + bl)
        g_pos = jnp.dot(Ss, jnp.dot(root_p, wlr, preferred_element_type=jnp.float32),
                        preferred_element_type=jnp.float32)
        g_neg = jnp.dot(Ss, jnp.dot(root_n, wlr, preferred_element_type=jnp.float32),
                        preferred_element_type=jnp.float32)
        t_pos = jnp.maximum(g_pos + shared, 0.0)
        t_neg = jnp.maximum(g_neg + shared, 0.0)
        s_pos = jnp.dot(t_pos, wus, preferred_element_type=jnp.float32) + bus
        s_neg = jnp.dot(t_neg, wus, preferred_element_type=jnp.float32) + bus

        # --- JSD partial sums, reduced in VMEM (scores never leave the chip) -
        sp_pos = _softplus_neg(s_pos)
        sp_neg = _softplus_neg(s_neg)
        e_pos = e_pos + jnp.sum((LOG2 - sp_pos) * ev)
        e_neg = e_neg + jnp.sum((sp_neg + s_neg - LOG2) * ev)

        # --- push / reduce (depth-2 path: messages are fc(m)) ----------------
        mean_msg = jnp.dot(
            A, jnp.dot(m, wfc, preferred_element_type=jnp.float32) + bfc,
            preferred_element_type=jnp.float32)
        keep = mk > 0.0
        m = jnp.where(keep, jnp.maximum(fcx + mean_msg, 0.0), m)
        root_p = jnp.where(keep, jnp.dot(A, root_p, preferred_element_type=jnp.float32), root_p)
        root_n = jnp.where(keep, jnp.dot(A, root_n, preferred_element_type=jnp.float32), root_n)

    loss_ref[0, 0] = e_neg * inv_neg - e_pos * inv_pos


def disc_loss(positive, perm_mat, features, step_tensors, disc_p, total_edges):
    ssrc, sdst, ev, agg, mask = step_tensors
    n_steps = int(ssrc.shape[0])
    inv = 1.0 / float(total_edges)
    return pl.pallas_call(
        functools.partial(_disc_loss_kernel, n_steps, inv, inv),
        out_shape=jax.ShapeDtypeStruct((1, 1), jnp.float32),
        in_specs=_vmem_specs(16),
        out_specs=pl.BlockSpec(memory_space=pltpu.MemorySpace.VMEM),
        compiler_params=_COMPILER_PARAMS,
    )(positive, perm_mat, features, ssrc, sdst, ev, agg, mask,
      disc_p["W_lr"], disc_p["W_lm"], disc_p["W_lx"], disc_p["b_lin"],
      disc_p["W_us"], disc_p["b_us"], disc_p["W_fc"], disc_p["b_fc"])


# ---------------------------------------------------------------------------
# Model orchestration: exactly 2 pallas_calls per forward.
# ---------------------------------------------------------------------------
def egi_forward(a_agg, features, perm_mat, step_tensors, total_edges, params):
    positive = encoder_forward(a_agg, features, params["encoder"], eps=0.0)
    loss = disc_loss(positive, perm_mat, features, step_tensors,
                     params["disc"], total_edges)
    return loss[0, 0]


# ---------------------------------------------------------------------------
# Deterministic parameter / synthetic graph construction (host side)
# ---------------------------------------------------------------------------
def init_params(key, in_feats, n_hidden, n_layers):
    keys = jax.random.split(key, n_layers + 3)
    enc = []
    fin = in_feats
    for i in range(n_layers):
        w = 0.1 * jax.random.normal(keys[i], (fin, n_hidden), jnp.float32)
        b = jnp.zeros((1, n_hidden), jnp.float32)
        enc.append((w, b))
        fin = n_hidden
    w_fc = 0.1 * jax.random.normal(keys[n_layers], (in_feats, n_hidden), jnp.float32)
    w_lin = 0.1 * jax.random.normal(
        keys[n_layers + 1], (in_feats + 2 * n_hidden, n_hidden), jnp.float32)
    w_us = 0.1 * jax.random.normal(keys[n_layers + 2], (n_hidden, 1), jnp.float32)
    disc = {
        "W_fc": w_fc,
        "b_fc": jnp.zeros((1, n_hidden), jnp.float32),
        # W_lin row-sliced to match the concat order [root | m | x]; the concat
        # becomes three MXU matmuls inside the fused discriminator kernel.
        "W_lr": w_lin[:n_hidden],
        "W_lm": w_lin[n_hidden:2 * n_hidden],
        "W_lx": w_lin[2 * n_hidden:],
        "b_lin": jnp.zeros((1, n_hidden), jnp.float32),
        "W_us": w_us,
        "b_us": jnp.zeros((1, 1), jnp.float32),
    }
    return {"encoder": enc, "disc": disc}


def build_steps(adj, hop_src_nodes, n_nodes):
    """Per-hop edge lists -> stacked selection / aggregation / mask tensors."""
    per_step = []
    for src_nodes in hop_src_nodes:
        src_list, dst_list = [], []
        for s in src_nodes:
            for d in range(n_nodes):
                if adj[s, d]:
                    src_list.append(s)
                    dst_list.append(d)
        per_step.append((src_list, dst_list))
    e_max = max(len(s[0]) for s in per_step)
    e_pad = ((e_max + 7) // 8) * 8          # sublane-align the edge axis
    n_steps = len(per_step)

    ssrc = np.zeros((n_steps, e_pad, n_nodes), np.float32)
    sdst = np.zeros((n_steps, e_pad, n_nodes), np.float32)
    ev = np.zeros((n_steps, e_pad, 1), np.float32)
    agg = np.zeros((n_steps, n_nodes, n_nodes), np.float32)
    mask = np.zeros((n_steps, n_nodes, 1), np.float32)
    total_edges = 0
    for si, (srcs, dsts) in enumerate(per_step):
        for e, (s, d) in enumerate(zip(srcs, dsts)):
            ssrc[si, e, s] = 1.0
            sdst[si, e, d] = 1.0
            ev[si, e, 0] = 1.0
            agg[si, d, s] += 1.0
        indeg = agg[si].sum(axis=1, keepdims=True)
        mask[si] = (indeg > 0).astype(np.float32)
        agg[si] = agg[si] / np.maximum(indeg, 1.0)
        total_edges += len(srcs)
    return ((jnp.asarray(ssrc), jnp.asarray(sdst), jnp.asarray(ev),
             jnp.asarray(agg), jnp.asarray(mask)), total_edges)


if __name__ == "__main__":
    N = 16           # number of graph nodes
    IN_FEATS = 32    # input feature dim (== n_hidden, required by GNNDiscLayer.fc on depth-2 path)
    N_HIDDEN = 32
    N_LAYERS = 2     # GIN layers == discriminator hops (k)

    root_key = jax.random.PRNGKey(0)
    k_feat, k_graph, k_perm, k_param = jax.random.split(root_key, 4)

    features = jax.random.normal(k_feat, (N, IN_FEATS), jnp.float32)

    # deterministic random directed graph (plus a ring so every node has an out-edge)
    adj = np.array(jax.random.uniform(k_graph, (N, N)) < 0.3)
    np.fill_diagonal(adj, False)
    for i in range(N):
        adj[i, (i + 1) % N] = True
    # GINConv 'sum' neighbor aggregation operator: agg[i] = sum_{j -> i} h[j]
    a_agg = jnp.asarray(adj.T.astype(np.float32))

    # TODO(synk): DGL block extraction / edge_subgraph / find_edges node-id
    # remapping is host-side graph bookkeeping with no Pallas equivalent; the
    # per-hop edge sets are built deterministically here instead.
    step_tensors, total_edges = build_steps(
        adj, [list(range(8)), list(range(4))], N)   # hop k-1 first, then hop 0

    # negative = positive[perm], realized in-kernel via a permutation matrix
    perm = np.asarray(jax.random.permutation(k_perm, N))
    perm_mat = jnp.asarray(np.eye(N, dtype=np.float32)[perm])

    params = init_params(k_param, IN_FEATS, N_HIDDEN, N_LAYERS)

    loss = egi_forward(a_agg, features, perm_mat, step_tensors, total_edges, params)
    loss = jax.block_until_ready(loss)
    assert loss.shape == () and jnp.isfinite(loss)
    print("KERNEL_OK")
</pallas_src>

<mosaic_0001>
module attributes {stable_mosaic.version = 11 : i64} {
  func.func @_encoder_kernel(%arg0: memref<16x16xf32, #tpu.memory_space<vmem>>, %arg1: memref<16x32xf32, #tpu.memory_space<vmem>>, %arg2: memref<32x32xf32, #tpu.memory_space<vmem>>, %arg3: memref<1x32xf32, #tpu.memory_space<vmem>>, %arg4: memref<32x32xf32, #tpu.memory_space<vmem>>, %arg5: memref<1x32xf32, #tpu.memory_space<vmem>>, %arg6: memref<16x32xf32, #tpu.memory_space<vmem>>) attributes {dimension_semantics = [], scalar_prefetch = 0 : i64, scratch_operands = 0 : i64, tpu.core_type = #tpu.core_type<tc>} {
    %c0 = arith.constant 0 : index
    %c0_0 = arith.constant 0 : index
    %0 = vector.load %arg0[%c0, %c0_0] : memref<16x16xf32, #tpu.memory_space<vmem>>, vector<16x16xf32>
    %c0_1 = arith.constant 0 : index
    %c0_2 = arith.constant 0 : index
    %1 = vector.load %arg1[%c0_1, %c0_2] : memref<16x32xf32, #tpu.memory_space<vmem>>, vector<16x32xf32>
    %c0_3 = arith.constant 0 : index
    %c0_4 = arith.constant 0 : index
    %2 = vector.load %arg2[%c0_3, %c0_4] : memref<32x32xf32, #tpu.memory_space<vmem>>, vector<32x32xf32>
    %c0_5 = arith.constant 0 : index
    %c0_6 = arith.constant 0 : index
    %3 = vector.load %arg3[%c0_5, %c0_6] : memref<1x32xf32, #tpu.memory_space<vmem>>, vector<1x32xf32>
    %cst = arith.constant dense<0.000000e+00> : vector<16x32xf32>
    %4 = tpu.matmul %0, %1, %cst {dimension_numbers = #tpu.dot_dimension_numbers<[1], [0], [0], [1], [0, 0, 1, 1], [], []>} : vector<16x16xf32>, vector<16x32xf32>, vector<16x32xf32> -> vector<16x32xf32>
    %cst_7 = arith.constant 1.000000e+00 : f32
    %5 = vector.broadcast %cst_7 : f32 to vector<16x32xf32>
    %6 = arith.mulf %5, %1 : vector<16x32xf32>
    %7 = arith.addf %4, %6 : vector<16x32xf32>
    %cst_8 = arith.constant dense<0.000000e+00> : vector<16x32xf32>
    %8 = tpu.matmul %7, %2, %cst_8 {dimension_numbers = #tpu.dot_dimension_numbers<[1], [0], [0], [1], [0, 0, 1, 1], [], []>} : vector<16x32xf32>, vector<32x32xf32>, vector<16x32xf32> -> vector<16x32xf32>
    %9 = vector.broadcast %3 : vector<1x32xf32> to vector<16x32xf32>
    %10 = arith.addf %8, %9 : vector<16x32xf32>
    %cst_9 = arith.constant dense<0.000000e+00> : vector<32xf32>
    %11 = vector.multi_reduction <add>, %10, %cst_9 [0] : vector<16x32xf32> to vector<32xf32>
    %12 = vector.shape_cast %11 : vector<32xf32> to vector<1x32xf32>
    %cst_10 = arith.constant 1.600000e+01 : f32
    %13 = vector.broadcast %cst_10 : f32 to vector<1x32xf32>
    %14 = arith.divf %12, %13 : vector<1x32xf32>
    %15 = arith.mulf %10, %10 : vector<16x32xf32>
    %cst_11 = arith.constant dense<0.000000e+00> : vector<32xf32>
    %16 = vector.multi_reduction <add>, %15, %cst_11 [0] : vector<16x32xf32> to vector<32xf32>
    %17 = vector.shape_cast %16 : vector<32xf32> to vector<1x32xf32>
    %cst_12 = arith.constant 1.600000e+01 : f32
    %18 = vector.broadcast %cst_12 : f32 to vector<1x32xf32>
    %19 = arith.divf %17, %18 : vector<1x32xf32>
    %20 = arith.mulf %14, %14 : vector<1x32xf32>
    %21 = arith.subf %19, %20 : vector<1x32xf32>
    %cst_13 = arith.constant 0.000000e+00 : f32
    %22 = vector.broadcast %cst_13 : f32 to vector<1x32xf32>
    %23 = arith.maximumf %21, %22 : vector<1x32xf32>
    %24 = vector.broadcast %14 : vector<1x32xf32> to vector<16x32xf32>
    %25 = arith.subf %10, %24 : vector<16x32xf32>
    %cst_14 = arith.constant 9.99999974E-6 : f32
    %26 = vector.broadcast %cst_14 : f32 to vector<1x32xf32>
    %27 = arith.addf %23, %26 : vector<1x32xf32>
    %28 = math.rsqrt %27 : vector<1x32xf32>
    %29 = vector.broadcast %28 : vector<1x32xf32> to vector<16x32xf32>
    %30 = arith.mulf %25, %29 : vector<16x32xf32>
    %cst_15 = arith.constant 0.000000e+00 : f32
    %31 = vector.broadcast %cst_15 : f32 to vector<16x32xf32>
    %32 = arith.maximumf %30, %31 : vector<16x32xf32>
    %cst_16 = arith.constant dense<0.000000e+00> : vector<32xf32>
    %33 = vector.multi_reduction <add>, %32, %cst_16 [0] : vector<16x32xf32> to vector<32xf32>
    %34 = vector.shape_cast %33 : vector<32xf32> to vector<1x32xf32>
    %cst_17 = arith.constant 1.600000e+01 : f32
    %35 = vector.broadcast %cst_17 : f32 to vector<1x32xf32>
    %36 = arith.divf %34, %35 : vector<1x32xf32>
    %37 = arith.mulf %32, %32 : vector<16x32xf32>
    %cst_18 = arith.constant dense<0.000000e+00> : vector<32xf32>
    %38 = vector.multi_reduction <add>, %37, %cst_18 [0] : vector<16x32xf32> to vector<32xf32>
    %39 = vector.shape_cast %38 : vector<32xf32> to vector<1x32xf32>
    %cst_19 = arith.constant 1.600000e+01 : f32
    %40 = vector.broadcast %cst_19 : f32 to vector<1x32xf32>
    %41 = arith.divf %39, %40 : vector<1x32xf32>
    %42 = arith.mulf %36, %36 : vector<1x32xf32>
    %43 = arith.subf %41, %42 : vector<1x32xf32>
    %cst_20 = arith.constant 0.000000e+00 : f32
    %44 = vector.broadcast %cst_20 : f32 to vector<1x32xf32>
    %45 = arith.maximumf %43, %44 : vector<1x32xf32>
    %46 = vector.broadcast %36 : vector<1x32xf32> to vector<16x32xf32>
    %47 = arith.subf %32, %46 : vector<16x32xf32>
    %cst_21 = arith.constant 9.99999974E-6 : f32
    %48 = vector.broadcast %cst_21 : f32 to vector<1x32xf32>
    %49 = arith.addf %45, %48 : vector<1x32xf32>
    %50 = math.rsqrt %49 : vector<1x32xf32>
    %51 = vector.broadcast %50 : vector<1x32xf32> to vector<16x32xf32>
    %52 = arith.mulf %47, %51 : vector<16x32xf32>
    %cst_22 = arith.constant 0.000000e+00 : f32
    %53 = vector.broadcast %cst_22 : f32 to vector<16x32xf32>
    %54 = arith.maximumf %52, %53 : vector<16x32xf32>
    %c0_23 = arith.constant 0 : index
    %c0_24 = arith.constant 0 : index
    %55 = vector.load %arg4[%c0_23, %c0_24] : memref<32x32xf32, #tpu.memory_space<vmem>>, vector<32x32xf32>
    %c0_25 = arith.constant 0 : index
    %c0_26 = arith.constant 0 : index
    %56 = vector.load %arg5[%c0_25, %c0_26] : memref<1x32xf32, #tpu.memory_space<vmem>>, vector<1x32xf32>
    %cst_27 = arith.constant dense<0.000000e+00> : vector<16x32xf32>
    %57 = tpu.matmul %0, %54, %cst_27 {dimension_numbers = #tpu.dot_dimension_numbers<[1], [0], [0], [1], [0, 0, 1, 1], [], []>} : vector<16x16xf32>, vector<16x32xf32>, vector<16x32xf32> -> vector<16x32xf32>
    %cst_28 = arith.constant 1.000000e+00 : f32
    %58 = vector.broadcast %cst_28 : f32 to vector<16x32xf32>
    %59 = arith.mulf %58, %54 : vector<16x32xf32>
    %60 = arith.addf %57, %59 : vector<16x32xf32>
    %cst_29 = arith.constant dense<0.000000e+00> : vector<16x32xf32>
    %61 = tpu.matmul %60, %55, %cst_29 {dimension_numbers = #tpu.dot_dimension_numbers<[1], [0], [0], [1], [0, 0, 1, 1], [], []>} : vector<16x32xf32>, vector<32x32xf32>, vector<16x32xf32> -> vector<16x32xf32>
    %62 = vector.broadcast %56 : vector<1x32xf32> to vector<16x32xf32>
    %63 = arith.addf %61, %62 : vector<16x32xf32>
    %cst_30 = arith.constant dense<0.000000e+00> : vector<32xf32>
    %64 = vector.multi_reduction <add>, %63, %cst_30 [0] : vector<16x32xf32> to vector<32xf32>
    %65 = vector.shape_cast %64 : vector<32xf32> to vector<1x32xf32>
    %cst_31 = arith.constant 1.600000e+01 : f32
    %66 = vector.broadcast %cst_31 : f32 to vector<1x32xf32>
    %67 = arith.divf %65, %66 : vector<1x32xf32>
    %68 = arith.mulf %63, %63 : vector<16x32xf32>
    %cst_32 = arith.constant dense<0.000000e+00> : vector<32xf32>
    %69 = vector.multi_reduction <add>, %68, %cst_32 [0] : vector<16x32xf32> to vector<32xf32>
    %70 = vector.shape_cast %69 : vector<32xf32> to vector<1x32xf32>
    %cst_33 = arith.constant 1.600000e+01 : f32
    %71 = vector.broadcast %cst_33 : f32 to vector<1x32xf32>
    %72 = arith.divf %70, %71 : vector<1x32xf32>
    %73 = arith.mulf %67, %67 : vector<1x32xf32>
    %74 = arith.subf %72, %73 : vector<1x32xf32>
    %cst_34 = arith.constant 0.000000e+00 : f32
    %75 = vector.broadcast %cst_34 : f32 to vector<1x32xf32>
    %76 = arith.maximumf %74, %75 : vector<1x32xf32>
    %77 = vector.broadcast %67 : vector<1x32xf32> to vector<16x32xf32>
    %78 = arith.subf %63, %77 : vector<16x32xf32>
    %cst_35 = arith.constant 9.99999974E-6 : f32
    %79 = vector.broadcast %cst_35 : f32 to vector<1x32xf32>
    %80 = arith.addf %76, %79 : vector<1x32xf32>
    %81 = math.rsqrt %80 : vector<1x32xf32>
    %82 = vector.broadcast %81 : vector<1x32xf32> to vector<16x32xf32>
    %83 = arith.mulf %78, %82 : vector<16x32xf32>
    %cst_36 = arith.constant 0.000000e+00 : f32
    %84 = vector.broadcast %cst_36 : f32 to vector<16x32xf32>
    %85 = arith.maximumf %83, %84 : vector<16x32xf32>
    %cst_37 = arith.constant dense<0.000000e+00> : vector<32xf32>
    %86 = vector.multi_reduction <add>, %85, %cst_37 [0] : vector<16x32xf32> to vector<32xf32>
    %87 = vector.shape_cast %86 : vector<32xf32> to vector<1x32xf32>
    %cst_38 = arith.constant 1.600000e+01 : f32
    %88 = vector.broadcast %cst_38 : f32 to vector<1x32xf32>
    %89 = arith.divf %87, %88 : vector<1x32xf32>
    %90 = arith.mulf %85, %85 : vector<16x32xf32>
    %cst_39 = arith.constant dense<0.000000e+00> : vector<32xf32>
    %91 = vector.multi_reduction <add>, %90, %cst_39 [0] : vector<16x32xf32> to vector<32xf32>
    %92 = vector.shape_cast %91 : vector<32xf32> to vector<1x32xf32>
    %cst_40 = arith.constant 1.600000e+01 : f32
    %93 = vector.broadcast %cst_40 : f32 to vector<1x32xf32>
    %94 = arith.divf %92, %93 : vector<1x32xf32>
    %95 = arith.mulf %89, %89 : vector<1x32xf32>
    %96 = arith.subf %94, %95 : vector<1x32xf32>
    %cst_41 = arith.constant 0.000000e+00 : f32
    %97 = vector.broadcast %cst_41 : f32 to vector<1x32xf32>
    %98 = arith.maximumf %96, %97 : vector<1x32xf32>
    %99 = vector.broadcast %89 : vector<1x32xf32> to vector<16x32xf32>
    %100 = arith.subf %85, %99 : vector<16x32xf32>
    %cst_42 = arith.constant 9.99999974E-6 : f32
    %101 = vector.broadcast %cst_42 : f32 to vector<1x32xf32>
    %102 = arith.addf %98, %101 : vector<1x32xf32>
    %103 = math.rsqrt %102 : vector<1x32xf32>
    %104 = vector.broadcast %103 : vector<1x32xf32> to vector<16x32xf32>
    %105 = arith.mulf %100, %104 : vector<16x32xf32>
    %cst_43 = arith.constant 0.000000e+00 : f32
    %106 = vector.broadcast %cst_43 : f32 to vector<16x32xf32>
    %107 = arith.maximumf %105, %106 : vector<16x32xf32>
    %c0_44 = arith.constant 0 : index
    %c0_45 = arith.constant 0 : index
    %108 = vector.load %arg6[%c0_44, %c0_45] : memref<16x32xf32, #tpu.memory_space<vmem>>, vector<16x32xf32>
    tpu.vector_store %arg6[%c0_44, %c0_45], %107 {strides = array<i32>} : memref<16x32xf32, #tpu.memory_space<vmem>>, vector<16x32xf32>,
    return
  }
}

</mosaic_0001>

<bundles_post_ra>
// kernel: tpu_custom_call.1
= control target key start
LH: loop header
LB: loop body
LE: loop exit
PB: predicated region body
PF: predicated region fallthrough
CT: control target
= control target key end

     0   :  { %11 = vsyncpa [#allocation3], 0  ;;  %s696_s0 = inlined_call_operand.hbm [shape: f32[16,16], index: 0, kind: input, shape index: {}]   ;;  %s697_s1 = inlined_call_operand.hbm [shape: f32[16,32], index: 1, kind: input, shape index: {}]   ;;  %s698_s2 = inlined_call_operand.hbm [shape: f32[32,32], index: 2, kind: input, shape index: {}]   ;;  %s699_s3 = inlined_call_operand.vmem [shape: f32[1,32], index: 3, kind: input, shape index: {}]   ;;  %s700_s4 = inlined_call_operand.hbm [shape: f32[32,32], index: 4, kind: input, shape index: {}]   ;;  %s701_s5 = inlined_call_operand.vmem [shape: f32[1,32], index: 5, kind: input, shape index: {}]   ;;  %s702_s6 = inlined_call_operand.hbm [shape: f32[16,32], index: 6, kind: output, shape index: {}]  }
   0x1   :  { %12 = vsyncpa [#allocation6], 0 }
   0x2   :  { %13 = vsyncpa [#allocation9], 0 }
   0x3   :  { %14 = vsyncpa [#allocation4], 0  ;;  %s32_s23 = sshll.u32 %s697_s1, 4  ;;  %s573_s24 = smov [#allocation5]   ;;  %s33_s23 = int_to_ptr.hbm [resolvable:$true] %s32_s23 }
   0x4   :  { %s34_s25 = sshll.u32 %s573_s24, 4  ;;  %s19_s28 = sshll.u32 %s696_s0, 4  ;;  %s35_s25 = int_to_ptr.vmem [resolvable:$true] %s34_s25  ;;  %s20_s28 = int_to_ptr.hbm [resolvable:$true] %s19_s28 }
   0x5   :  { %s574_s29 = smov 128   ;;  %s575_s30 = smov 8  }
   0x6   :  { %40 = dma.hbm_to_vmem [thread:$0]  %s33_s23, 256, %s35_s25, [#allocation6], %s574_s29, %s574_s29, %s575_s30  }
   0x7   :  { %s576_s7 = smov [#allocation2]   ;;  %s45_s1 = sshll.u32 %s698_s2, 4  ;;  %s46_s1 = int_to_ptr.hbm [resolvable:$true] %s45_s1 }
   0x8   :  { %s21_s8 = sshll.u32 %s576_s7, 4  ;;  %s60_s12 = sshll.u32 %s700_s4, 4  ;;  %s22_s8 = int_to_ptr.vmem [resolvable:$true] %s21_s8  ;;  %s61_s12 = int_to_ptr.hbm [resolvable:$true] %s60_s12 }
   0x9   :  { %27 = dma.hbm_to_vmem [thread:$0]  %s20_s28, 256, %s22_s8, [#allocation3], %s574_s29, %s574_s29, %s575_s30  }
   0xa   :  { %s577_s13 = smov [#allocation7]   ;;  %s578_s15 = smov [#allocation8]  }
   0xb   :  { %s47_s14 = sshll.u32 %s577_s13, 4  ;;  %s62_s2 = sshll.u32 %s578_s15, 4  ;;  %s48_s14 = int_to_ptr.vmem [resolvable:$true] %s47_s14  ;;  %s63_s2 = int_to_ptr.vmem [resolvable:$true] %s62_s2 }
   0xc   :  { %53 = dma.hbm_to_vmem [thread:$0]  %s46_s1, 512, %s48_s14, [#allocation6], %s574_s29, %s574_s29, %s575_s30  }
   0xd   :  { %68 = dma.hbm_to_vmem [thread:$0]  %s61_s12, 512, %s63_s2, [#allocation9], %s574_s29, %s574_s29, %s575_s30  }
   0xe   :  { %565 = dma.done.wait [#allocation3], 256  }
   0xf   :  { %566 = vsyncadd [#allocation3], 4294967040 }
  0x10   :  { %567 = dma.done.wait [#allocation6], 768  }
  0x11   :  { %568 = vsyncadd [#allocation6], 4294966528 }
  0x12   :  { %569 = dma.done.wait [#allocation9], 512  }
  0x13   :  { %570 = vsyncadd [#allocation9], 4294966784  ;;  %v90_v0 = vld [vmem:[#allocation5 + $0x8] sm:$0xff]  ;;  %v89_v1 = vld [vmem:[#allocation5] sm:$0xff]  ;;  %vm96_vm0 = vcmask 130048   ;;  %vm129_vm1 = vcmask 261120  }
  0x14   :  { %117 = vmatpush.msra.mxu0 %v90_v0  ;;  %v640_v2 = vld [vmem:[#allocation2] sm:$0xff]  ;;  %v94_v3 = vld [vmem:[#allocation7 + $0x18] sm:$0xff]  ;;  %v93_v4 = vld [vmem:[#allocation7 + $0x10] sm:$0xff]  ;;  %v579_v12 = vmov 16.0   ;;  %s402_s21 = sshll.u32 %s702_s6, 4  ;;  %s403_s21 = int_to_ptr.hbm [resolvable:$true] %s402_s21 }
  0x15   :  { %148 = vmatpush.msra.mxu1 %v94_v3  ;;  %v644_v5 = vld [vmem:[#allocation2 + $0x8] sm:$0xff]  ;;  %v91_v7 = vld [vmem:[#allocation7] sm:$0xff]  ;;  %435 = vrcp.f32 %v579_v12 }
  0x16   :  { %118 = vmatpush.msra.mxu0 %v89_v1  ;;  %v92_v6 = vld [vmem:[#allocation7 + $0x8] sm:$0xff]  ;;  %v433_v14 = vld [vmem:[%s699_s3] ss:$0 sm:$0xff] }
  0x17   :  { %417 = vmatmul.msk.f32.vlgmr.msra.gmra.mxu0 %vm96_vm0, %v640_v2  ;;  %149 = vmatpush.msra.mxu1 %v93_v4 }
  0x19   :  { %150 = vmatpush.msra.mxu1 %v92_v6 }
  0x1b   :  { %151 = vmatpush.msra.mxu1 %v91_v7  ;;  %v436_v15 = vpop.eup %435 }
  0x1c   :  { %v169_v17 = vmul.f32 16.0, %v436_v15  ;;  %vm173_vm2 = vweird.f32 %v436_v15 }
  0x1e   :  { %v170_v23 = vsub.f32 1.0, %v169_v17 }
  0x1f   :  { %418 = vmatmul.msk.f32.gmra.mxu0 %vm96_vm0, %v644_v5 }
  0x20   :  { %v171_v30 = vmul.f32 %v436_v15, %v170_v23 }
  0x22   :  { %v172_v35 = vadd.f32 %v436_v15, %v171_v30 }
  0x24   :  { %v657_v40 = vsel %vm173_vm2, %v436_v15, %v172_v35 }
  0x94   :  { %v120_v8 = vpop.f32.mrf.mxu0 }
  0x95   :  { %v121_v9 = vadd.f32 %v120_v8, %v89_v1 }
  0x97   :  { %419 = vmatmul.msk.f32.vlgmr.msra.gmra.mxu1 %vm129_vm1, %v121_v9 }
  0x9c   :  { %v123_v10 = vpop.f32.mrf.mxu0 }
  0x9d   :  { %v124_v11 = vadd.f32 %v123_v10, %v90_v0 }
  0x9f   :  { %420 = vmatmul.msk.f32.gmra.mxu1 %vm129_vm1, %v124_v11 }
 0x114   :  { %v153_v13 = vpop.f32.mrf.mxu1 }
 0x115   :  { %v154_v16 = vadd.f32 %v433_v14, %v153_v13 }
 0x117   :  { %v176_v19 = vmul.f32 %v154_v16, %v154_v16  ;;  %v159_v21 = vsel %vm129_vm1, %v154_v16, 0.0 }
 0x119   :  { %v178_v26 = vsel %vm129_vm1, %v176_v19, 0.0 }
 0x11c   :  { %v156_v18 = vpop.f32.mrf.mxu1 }
 0x11d   :  { %v157_v20 = vadd.f32 %v433_v14, %v156_v18 }
 0x11f   :  { %v160_v22 = vsel %vm129_vm1, %v157_v20, 0.0  ;;  %v177_v24 = vmul.f32 %v157_v20, %v157_v20 }
 0x120   :  { %v161_v25 = vadd.f32 %v160_v22, %v159_v21 }
 0x121   :  { %v179_v27 = vsel %vm129_vm1, %v177_v24, 0.0 }
 0x122   :  { %v162_v28 = vrot.slane %v161_v25, 4  ;;  %v180_v29 = vadd.f32 %v179_v27, %v178_v26  ;;  %v253_v27 = vld [vmem:[#allocation8 + $0x18] sm:$0xff] }
 0x123   :  { %299 = vmatpush.msra.mxu3 %v253_v27 }
 0x124   :  { %v163_v31 = vadd.f32 %v162_v28, %v161_v25  ;;  %v181_v32 = vrot.slane %v180_v29, 4  ;;  %v252_v28 = vld [vmem:[#allocation8 + $0x10] sm:$0xff] }
 0x125   :  { %300 = vmatpush.msra.mxu3 %v252_v28 }
 0x126   :  { %v164_v33 = vrot.slane %v163_v31, 2  ;;  %v182_v34 = vadd.f32 %v181_v32, %v180_v29 }
 0x128   :  { %v165_v36 = vadd.f32 %v164_v33, %v163_v31  ;;  %v183_v37 = vrot.slane %v182_v34, 2 }
 0x12a   :  { %v166_v38 = vrot.slane %v165_v36, 1  ;;  %v184_v39 = vadd.f32 %v183_v37, %v182_v34 }
 0x12c   :  { %v167_v41 = vadd.f32 %v166_v38, %v165_v36  ;;  %v185_v42 = vrot.slane %v184_v39, 1 }
 0x12e   :  { %v175_v43 = vmul.f32 %v657_v40, %v167_v41  ;;  %v186_v44 = vadd.f32 %v185_v42, %v184_v39 }
 0x130   :  { %v187_v45 = vmul.f32 %v186_v44, %v657_v40  ;;  %v188_v46 = vmul.f32 %v175_v43, %v175_v43  ;;  %v191_v56 = vsub.f32 %v154_v16, %v175_v43  ;;  %v192_v57 = vsub.f32 %v157_v20, %v175_v43  ;;  %v251_v43 = vld [vmem:[#allocation8 + $0x8] sm:$0xff]  ;;  %v250_v44 = vld [vmem:[#allocation8] sm:$0xff] }
 0x131   :  { %301 = vmatpush.msra.mxu3 %v251_v43 }
 0x132   :  { %v189_v47 = vsub.f32 %v187_v45, %v188_v46 }
 0x133   :  { %302 = vmatpush.msra.mxu3 %v250_v44 }
 0x134   :  { %v190_v48 = vmax.f32 %v189_v47, 0.0 }
 0x136   :  { %v193_v49 = vadd.f32 1e-05, %v190_v48 }
 0x138   :  { %437 = vrsqrt.f32 %v193_v49  ;;  %vm200_vm4 = vweird.f32 %v193_v49 }
 0x13e   :  { %v438_v50 = vpop.eup %437 }
 0x13f   :  { %v195_v51 = vmul.f32 %v438_v50, %v193_v49  ;;  %vm201_vm3 = vweird.f32 %v438_v50 }
 0x140   :  { %vm202_vm5 = vmor %vm200_vm4, %vm201_vm3 }
 0x141   :  { %v196_v52 = vmul.f32 %v438_v50, %v195_v51 }
 0x143   :  { %v197_v53 = vmul.f32 0.5, %v196_v52 }
 0x145   :  { %v198_v54 = vsub.f32 1.5, %v197_v53 }
 0x147   :  { %v199_v55 = vmul.f32 %v438_v50, %v198_v54 }
 0x149   :  { %v203_v58 = vsel %vm202_vm5, %v438_v50, %v199_v55 }
 0x14a   :  { %v204_v59 = vmul.f32 %v203_v58, %v191_v56  ;;  %v205_v60 = vmul.f32 %v203_v58, %v192_v57 }
 0x14c   :  { %v206_v61 = vmax.f32 %v204_v59, 0.0  ;;  %v207_v62 = vmax.f32 %v205_v60, 0.0 }
 0x14e   :  { %v208_v63 = vsel %vm129_vm1, %v206_v61, 0.0  ;;  %v209_v0 = vsel %vm129_vm1, %v207_v62, 0.0  ;;  %v218_v1 = vmul.f32 %v206_v61, %v206_v61  ;;  %v219_v3 = vmul.f32 %v207_v62, %v207_v62 }
 0x14f   :  { %v210_v4 = vadd.f32 %v209_v0, %v208_v63 }
 0x150   :  { %v220_v6 = vsel %vm129_vm1, %v218_v1, 0.0  ;;  %v221_v7 = vsel %vm129_vm1, %v219_v3, 0.0 }
 0x151   :  { %v211_v8 = vrot.slane %v210_v4, 4  ;;  %v222_v9 = vadd.f32 %v221_v7, %v220_v6 }
 0x153   :  { %v223_v10 = vrot.slane %v222_v9, 4  ;;  %v212_v11 = vadd.f32 %v211_v8, %v210_v4 }
 0x155   :  { %v224_v12 = vadd.f32 %v223_v10, %v222_v9  ;;  %v213_v13 = vrot.slane %v212_v11, 2 }
 0x157   :  { %v225_v14 = vrot.slane %v224_v12, 2  ;;  %v214_v15 = vadd.f32 %v213_v13, %v212_v11 }
 0x159   :  { %v215_v16 = vrot.slane %v214_v15, 1  ;;  %v226_v17 = vadd.f32 %v225_v14, %v224_v12 }
 0x15b   :  { %v216_v18 = vadd.f32 %v215_v16, %v214_v15  ;;  %v227_v19 = vrot.slane %v226_v17, 1 }
 0x15d   :  { %v217_v20 = vmul.f32 %v216_v18, %v657_v40  ;;  %v228_v21 = vadd.f32 %v227_v19, %v226_v17 }
 0x15f   :  { %v229_v22 = vmul.f32 %v228_v21, %v657_v40  ;;  %v230_v23 = vmul.f32 %v217_v20, %v217_v20  ;;  %v234_v35 = vsub.f32 %v207_v62, %v217_v20  ;;  %v233_v36 = vsub.f32 %v206_v61, %v217_v20 }
 0x161   :  { %v231_v24 = vsub.f32 %v229_v22, %v230_v23 }
 0x163   :  { %v232_v25 = vmax.f32 %v231_v24, 0.0 }
 0x165   :  { %v235_v26 = vadd.f32 1e-05, %v232_v25 }
 0x167   :  { %439 = vrsqrt.f32 %v235_v26  ;;  %vm242_vm7 = vweird.f32 %v235_v26 }
 0x16d   :  { %v440_v29 = vpop.eup %439 }
 0x16e   :  { %v237_v30 = vmul.f32 %v440_v29, %v235_v26  ;;  %vm243_vm6 = vweird.f32 %v440_v29 }
 0x16f   :  { %vm244_vm8 = vmor %vm242_vm7, %vm243_vm6 }
 0x170   :  { %v238_v31 = vmul.f32 %v440_v29, %v237_v30 }
 0x172   :  { %v239_v32 = vmul.f32 0.5, %v238_v31 }
 0x174   :  { %v240_v33 = vsub.f32 1.5, %v239_v32 }
 0x176   :  { %v241_v34 = vmul.f32 %v440_v29, %v240_v33 }
 0x178   :  { %v245_v37 = vsel %vm244_vm8, %v440_v29, %v241_v34 }
 0x179   :  { %v247_v38 = vmul.f32 %v245_v37, %v234_v35  ;;  %v246_v39 = vmul.f32 %v245_v37, %v233_v36 }
 0x17b   :  { %v249_v41 = vmax.f32 %v247_v38, 0.0  ;;  %v248_v42 = vmax.f32 %v246_v39, 0.0 }
 0x17d   :  { %269 = vmatpush.msra.mxu2 %v249_v41 }
 0x17f   :  { %270 = vmatpush.msra.mxu2 %v248_v42 }
 0x180   :  { %421 = vmatmul.msk.f32.vlgmr.msra.gmra.mxu2 %vm96_vm0, %v640_v2  ;;  %v434_v2 = vld [vmem:[%s701_s5] ss:$0 sm:$0xff]  ;;  %s580_s5 = smov [#allocation10]  }
 0x181   :  { %s400_s18 = sshll.u32 %s580_s5, 4  ;;  %s401_s18 = int_to_ptr.vmem [resolvable:$true] %s400_s18 }
 0x188   :  { %422 = vmatmul.msk.f32.gmra.mxu2 %vm96_vm0, %v644_v5 }
 0x203   :  { %v272_v45 = vpop.f32.mrf.mxu2 }
 0x204   :  { %v273_v46 = vadd.f32 %v272_v45, %v248_v42 }
 0x206   :  { %423 = vmatmul.msk.f32.vlgmr.msra.gmra.mxu3 %vm129_vm1, %v273_v46 }
 0x20b   :  { %v275_v47 = vpop.f32.mrf.mxu2 }
 0x20c   :  { %v276_v48 = vadd.f32 %v275_v47, %v249_v41 }
 0x20e   :  { %424 = vmatmul.msk.f32.gmra.mxu3 %vm129_vm1, %v276_v48 }
 0x289   :  { %v304_v49 = vpop.f32.mrf.mxu3 }
 0x28a   :  { %v305_v50 = vadd.f32 %v434_v2, %v304_v49 }
 0x28c   :  { %v320_v5 = vmul.f32 %v305_v50, %v305_v50  ;;  %v310_v53 = vsel %vm129_vm1, %v305_v50, 0.0 }
 0x28e   :  { %v322_v57 = vsel %vm129_vm1, %v320_v5, 0.0 }
 0x291   :  { %v307_v51 = vpop.f32.mrf.mxu3 }
 0x292   :  { %v308_v52 = vadd.f32 %v434_v2, %v307_v51 }
 0x294   :  { %v311_v54 = vsel %vm129_vm1, %v308_v52, 0.0  ;;  %v321_v55 = vmul.f32 %v308_v52, %v308_v52 }
 0x295   :  { %v312_v56 = vadd.f32 %v311_v54, %v310_v53 }
 0x296   :  { %v323_v58 = vsel %vm129_vm1, %v321_v55, 0.0 }
 0x297   :  { %v313_v59 = vrot.slane %v312_v56, 4  ;;  %v324_v60 = vadd.f32 %v323_v58, %v322_v57 }
 0x299   :  { %v314_v61 = vadd.f32 %v313_v59, %v312_v56  ;;  %v325_v62 = vrot.slane %v324_v60, 4 }
 0x29b   :  { %v315_v63 = vrot.slane %v314_v61, 2  ;;  %v326_v0 = vadd.f32 %v325_v62, %v324_v60 }
 0x29d   :  { %v316_v1 = vadd.f32 %v315_v63, %v314_v61  ;;  %v327_v3 = vrot.slane %v326_v0, 2 }
 0x29f   :  { %v317_v4 = vrot.slane %v316_v1, 1  ;;  %v328_v6 = vadd.f32 %v327_v3, %v326_v0 }
 0x2a1   :  { %v318_v7 = vadd.f32 %v317_v4, %v316_v1  ;;  %v329_v8 = vrot.slane %v328_v6, 1 }
 0x2a3   :  { %v319_v9 = vmul.f32 %v318_v7, %v657_v40  ;;  %v330_v10 = vadd.f32 %v329_v8, %v328_v6 }
 0x2a5   :  { %v331_v11 = vmul.f32 %v330_v10, %v657_v40  ;;  %v332_v12 = vmul.f32 %v319_v9, %v319_v9  ;;  %v335_v22 = vsub.f32 %v305_v50, %v319_v9  ;;  %v336_v23 = vsub.f32 %v308_v52, %v319_v9 }
 0x2a7   :  { %v333_v13 = vsub.f32 %v331_v11, %v332_v12 }
 0x2a9   :  { %v334_v14 = vmax.f32 %v333_v13, 0.0 }
 0x2ab   :  { %v337_v15 = vadd.f32 1e-05, %v334_v14 }
 0x2ad   :  { %441 = vrsqrt.f32 %v337_v15  ;;  %vm344_vm10 = vweird.f32 %v337_v15 }
 0x2b3   :  { %v442_v16 = vpop.eup %441 }
 0x2b4   :  { %v339_v17 = vmul.f32 %v442_v16, %v337_v15  ;;  %vm345_vm9 = vweird.f32 %v442_v16 }
 0x2b5   :  { %vm346_vm11 = vmor %vm344_vm10, %vm345_vm9 }
 0x2b6   :  { %v340_v18 = vmul.f32 %v442_v16, %v339_v17 }
 0x2b8   :  { %v341_v19 = vmul.f32 0.5, %v340_v18 }
 0x2ba   :  { %v342_v20 = vsub.f32 1.5, %v341_v19 }
 0x2bc   :  { %v343_v21 = vmul.f32 %v442_v16, %v342_v20 }
 0x2be   :  { %v347_v24 = vsel %vm346_vm11, %v442_v16, %v343_v21 }
 0x2bf   :  { %v348_v25 = vmul.f32 %v347_v24, %v335_v22  ;;  %v349_v26 = vmul.f32 %v347_v24, %v336_v23 }
 0x2c1   :  { %v350_v27 = vmax.f32 %v348_v25, 0.0  ;;  %v351_v28 = vmax.f32 %v349_v26, 0.0 }
 0x2c3   :  { %v352_v29 = vsel %vm129_vm1, %v350_v27, 0.0  ;;  %v353_v30 = vsel %vm129_vm1, %v351_v28, 0.0  ;;  %v362_v31 = vmul.f32 %v350_v27, %v350_v27  ;;  %v363_v32 = vmul.f32 %v351_v28, %v351_v28 }
 0x2c4   :  { %v354_v33 = vadd.f32 %v353_v30, %v352_v29 }
 0x2c5   :  { %v364_v34 = vsel %vm129_vm1, %v362_v31, 0.0  ;;  %v365_v35 = vsel %vm129_vm1, %v363_v32, 0.0 }
 0x2c6   :  { %v355_v36 = vrot.slane %v354_v33, 4  ;;  %v366_v37 = vadd.f32 %v365_v35, %v364_v34 }
 0x2c8   :  { %v356_v38 = vadd.f32 %v355_v36, %v354_v33  ;;  %v367_v39 = vrot.slane %v366_v37, 4 }
 0x2ca   :  { %v357_v41 = vrot.slane %v356_v38, 2  ;;  %v368_v42 = vadd.f32 %v367_v39, %v366_v37 }
 0x2cc   :  { %v358_v43 = vadd.f32 %v357_v41, %v356_v38  ;;  %v369_v44 = vrot.slane %v368_v42, 2 }
 0x2ce   :  { %v359_v45 = vrot.slane %v358_v43, 1  ;;  %v370_v46 = vadd.f32 %v369_v44, %v368_v42 }
 0x2d0   :  { %v360_v47 = vadd.f32 %v359_v45, %v358_v43  ;;  %v371_v48 = vrot.slane %v370_v46, 1 }
 0x2d2   :  { %v361_v49 = vmul.f32 %v360_v47, %v657_v40  ;;  %v372_v2 = vadd.f32 %v371_v48, %v370_v46 }
 0x2d4   :  { %v374_v50 = vmul.f32 %v361_v49, %v361_v49  ;;  %v373_v51 = vmul.f32 %v372_v2, %v657_v40  ;;  %v378_v60 = vsub.f32 %v351_v28, %v361_v49  ;;  %v377_v61 = vsub.f32 %v350_v27, %v361_v49 }
 0x2d6   :  { %v375_v5 = vsub.f32 %v373_v51, %v374_v50 }
 0x2d8   :  { %v376_v52 = vmax.f32 %v375_v5, 0.0 }
 0x2da   :  { %v379_v53 = vadd.f32 1e-05, %v376_v52 }
 0x2dc   :  { %443 = vrsqrt.f32 %v379_v53  ;;  %vm386_vm13 = vweird.f32 %v379_v53 }
 0x2e2   :  { %v444_v54 = vpop.eup %443 }
 0x2e3   :  { %v381_v55 = vmul.f32 %v444_v54, %v379_v53  ;;  %vm387_vm12 = vweird.f32 %v444_v54 }
 0x2e4   :  { %vm388_vm14 = vmor %vm386_vm13, %vm387_vm12 }
 0x2e5   :  { %v382_v56 = vmul.f32 %v444_v54, %v381_v55 }
 0x2e7   :  { %v383_v57 = vmul.f32 0.5, %v382_v56 }
 0x2e9   :  { %v384_v58 = vsub.f32 1.5, %v383_v57 }
 0x2eb   :  { %v385_v59 = vmul.f32 %v444_v54, %v384_v58 }
 0x2ed   :  { %v389_v62 = vsel %vm388_vm14, %v444_v54, %v385_v59 }
 0x2ee   :  { %v390_v63 = vmul.f32 %v389_v62, %v377_v61  ;;  %v391_v0 = vmul.f32 %v389_v62, %v378_v60 }
 0x2f0   :  { %v392_v40 = vmax.f32 %v390_v63, 0.0  ;;  %v393_v1 = vmax.f32 %v391_v0, 0.0 }
 0x2f2   :  { %394 = vst.msk [vmem:[#allocation10] sm:$0xff] %vm129_vm1, %v392_v40 }
 0x2f3   :  { %395 = vst.msk [vmem:[#allocation10 + $0x8] sm:$0xff] %vm129_vm1, %v393_v1 }
 0x2f4   :  { %408 = dma.vmem_to_hbm [thread:$0]  %s401_s18, 256, %s403_s21, [#allocation4], %s574_s29, %s574_s29, %s575_s30  }
 0x2f5   :  { %571 = dma.done.wait [#allocation4], 256  }
 0x2f6   :  { %572 = vsyncadd [#allocation4], 4294967040 }
 0x2f7   :  { %413 = vsyncpa [#allocation3], 1 }
 0x2f8   :  { %414 = vsyncpa [#allocation6], 1 }
 0x2f9   :  { %415 = vsyncpa [#allocation9], 1 }
 0x2fa   :  { %416 = vsyncpa [#allocation4], 1 }

</bundles_post_ra>
